<compile_context>
chip_gen: v7x
topology: tpu7x:2x2x1
jax: 0.10.0
libtpu: 0.0.40
codegen_flags: <defaults>
</compile_context>

<pallas_src>
import jax
import jax.numpy as jnp
from jax.experimental import pallas as pl
from jax.experimental.pallas import tpu as pltpu

LANE = 128


def outconv_kernel(w_ref, b_ref, x_ref, o_ref):
    # w_ref: (Cout, Cin) in SMEM     b_ref: (Cout,) in SMEM
    # x_ref: (Cin, TSR, LANE) VMEM   o_ref: (Cout, TSR, LANE) VMEM
    cout, cin = w_ref.shape
    for o in range(cout):                         # Cout*Cin unrolled VPU FMAs
        acc = w_ref[o, 0] * x_ref[0].astype(jnp.float32)      # (TSR, LANE)
        for c in range(1, cin):
            acc = acc + w_ref[o, c] * x_ref[c].astype(jnp.float32)
        o_ref[o] = (acc + b_ref[o]).astype(o_ref.dtype)       # full-block store


def outconv_pallas(x_nchw, weight, bias, *, tsr_cap=512):
    """1x1 Conv2d forward. x_nchw: (N, Cin, H, W); weight: (Cout, Cin, 1, 1);
    bias: (Cout,). Returns (N, Cout, H, W) matching nn.Conv2d."""
    N, Cin, H, W = x_nchw.shape
    Cout = weight.shape[0]
    HW = H * W

    # Free reshapes (no transposes); pad the flattened spatial axis only when
    # HW is not a multiple of 128 so the kernel always sees dense (TSR,128)
    # blocks (fixed tile + masked ragged tail, never an unbounded TS=HW block).
    w_mat = weight.reshape(Cout, Cin)
    b_vec = bias.reshape(Cout)

    rows_total = pl.cdiv(HW, LANE)
    HW_pad = rows_total * LANE
    x_flat = x_nchw.reshape(N, Cin, HW)
    if HW_pad != HW:
        x_flat = jnp.pad(x_flat, ((0, 0), (0, 0), (0, HW_pad - HW)))
    x_tiles = x_flat.reshape(N, Cin, rows_total, LANE)

    # Row tile: multiple of 8 (tsr_cap=512 -> 64K lanes, ~1.75 MiB traffic/step)
    # or the full row extent when the image is small.
    TSR = tsr_cap if rows_total > tsr_cap else rows_total

    grid = (N, pl.cdiv(rows_total, TSR))

    itemsize = jnp.dtype(x_nchw.dtype).itemsize
    cost = pl.CostEstimate(
        flops=2 * N * HW * Cin * Cout,
        transcendentals=0,
        bytes_accessed=(N * Cin * HW + N * Cout * HW) * itemsize
        + (Cout * Cin + Cout) * 4,
    )

    out_tiles = pl.pallas_call(
        outconv_kernel,
        out_shape=jax.ShapeDtypeStruct((N, Cout, rows_total, LANE), x_nchw.dtype),
        grid_spec=pltpu.PrefetchScalarGridSpec(
            num_scalar_prefetch=0,
            grid=grid,
            in_specs=[
                # Weights / bias: tiny, resident in SMEM for scalar reads.
                pl.BlockSpec(memory_space=pltpu.MemorySpace.SMEM),
                pl.BlockSpec(memory_space=pltpu.MemorySpace.SMEM),
                # Activations: (1, Cin, TSR, LANE) tile, batch dim squeezed.
                pl.BlockSpec((None, Cin, TSR, LANE), lambda n, s: (n, 0, s, 0)),
            ],
            out_specs=pl.BlockSpec((None, Cout, TSR, LANE),
                                   lambda n, s: (n, 0, s, 0)),
        ),
        compiler_params=pltpu.CompilerParams(
            dimension_semantics=("parallel", "parallel"),
        ),
        cost_estimate=cost,
    )(w_mat, b_vec, x_tiles)

    out = out_tiles.reshape(N, Cout, HW_pad)
    if HW_pad != HW:
        out = out[..., :HW]
    return out.reshape(N, Cout, H, W)


if __name__ == "__main__":
    key = jax.random.PRNGKey(0)
    k_x, k_w, k_b = jax.random.split(key, 3)

    N, Cin, Cout, H, Wd = 2, 4, 3, 16, 16

    x = jax.random.normal(k_x, (N, Cin, H, Wd), dtype=jnp.float32)
    # Deterministic synthetic parameters for Conv2d(in=4, out=3, kernel_size=1).
    weight = jax.random.normal(k_w, (Cout, Cin, 1, 1), dtype=jnp.float32) * 0.1
    bias = jax.random.normal(k_b, (Cout,), dtype=jnp.float32) * 0.1

    out = outconv_pallas(x, weight, bias)
    out = jax.block_until_ready(out)

    # Reference: 1x1 conv == channel einsum + bias.
    ref = jnp.einsum("nchw,oc->nohw", x, weight.reshape(Cout, Cin)) \
        + bias[None, :, None, None]
    assert out.shape == (N, Cout, H, Wd)
    assert jnp.allclose(out, ref, atol=1e-5, rtol=1e-5)

    print("KERNEL_OK")
</pallas_src>

<mosaic_0001>
module attributes {stable_mosaic.version = 11 : i64} {
  func.func @outconv_kernel(%arg0: i32, %arg1: i32, %arg2: memref<3x4xf32, #tpu.memory_space<smem>>, %arg3: memref<3xf32, #tpu.memory_space<smem>>, %arg4: memref<1x4x2x128xf32, #tpu.memory_space<vmem>>, %arg5: memref<1x3x2x128xf32, #tpu.memory_space<vmem>>) attributes {dimension_semantics = [#tpu.dimension_semantics<parallel>, #tpu.dimension_semantics<parallel>], iteration_bounds = array<i64: 2, 1>, scalar_prefetch = 0 : i64, scratch_operands = 0 : i64, tpu.core_type = #tpu.core_type<tc>, window_params = [{transform_indices = @transform_0, window_bounds = array<i64: 3, 4>}, {transform_indices = @transform_1, window_bounds = array<i64: 3>}, {transform_indices = @transform_2, window_bounds = array<i64: 1, 4, 2, 128>}, {transform_indices = @transform_3, window_bounds = array<i64: 1, 3, 2, 128>}]} {
    %c0 = arith.constant 0 : index
    %c0_0 = arith.constant 0 : index
    %0 = memref.load %arg2[%c0, %c0_0] : memref<3x4xf32, #tpu.memory_space<smem>>
    %c0_1 = arith.constant 0 : index
    %c0_2 = arith.constant 0 : index
    %c0_3 = arith.constant 0 : index
    %c0_4 = arith.constant 0 : index
    %1 = vector.load %arg4[%c0_1, %c0_2, %c0_3, %c0_4] : memref<1x4x2x128xf32, #tpu.memory_space<vmem>>, vector<1x1x2x128xf32>
    %2 = vector.shape_cast %1 : vector<1x1x2x128xf32> to vector<2x128xf32>
    %3 = vector.broadcast %0 : f32 to vector<2x128xf32>
    %4 = arith.mulf %3, %2 : vector<2x128xf32>
    %c0_5 = arith.constant 0 : index
    %c1 = arith.constant 1 : index
    %5 = memref.load %arg2[%c0_5, %c1] : memref<3x4xf32, #tpu.memory_space<smem>>
    %c0_6 = arith.constant 0 : index
    %c1_7 = arith.constant 1 : index
    %c0_8 = arith.constant 0 : index
    %c0_9 = arith.constant 0 : index
    %6 = vector.load %arg4[%c0_6, %c1_7, %c0_8, %c0_9] : memref<1x4x2x128xf32, #tpu.memory_space<vmem>>, vector<1x1x2x128xf32>
    %7 = vector.shape_cast %6 : vector<1x1x2x128xf32> to vector<2x128xf32>
    %8 = vector.broadcast %5 : f32 to vector<2x128xf32>
    %9 = arith.mulf %8, %7 : vector<2x128xf32>
    %10 = arith.addf %4, %9 : vector<2x128xf32>
    %c0_10 = arith.constant 0 : index
    %c2 = arith.constant 2 : index
    %11 = memref.load %arg2[%c0_10, %c2] : memref<3x4xf32, #tpu.memory_space<smem>>
    %c0_11 = arith.constant 0 : index
    %c2_12 = arith.constant 2 : index
    %c0_13 = arith.constant 0 : index
    %c0_14 = arith.constant 0 : index
    %12 = vector.load %arg4[%c0_11, %c2_12, %c0_13, %c0_14] : memref<1x4x2x128xf32, #tpu.memory_space<vmem>>, vector<1x1x2x128xf32>
    %13 = vector.shape_cast %12 : vector<1x1x2x128xf32> to vector<2x128xf32>
    %14 = vector.broadcast %11 : f32 to vector<2x128xf32>
    %15 = arith.mulf %14, %13 : vector<2x128xf32>
    %16 = arith.addf %10, %15 : vector<2x128xf32>
    %c0_15 = arith.constant 0 : index
    %c3 = arith.constant 3 : index
    %17 = memref.load %arg2[%c0_15, %c3] : memref<3x4xf32, #tpu.memory_space<smem>>
    %c0_16 = arith.constant 0 : index
    %c3_17 = arith.constant 3 : index
    %c0_18 = arith.constant 0 : index
    %c0_19 = arith.constant 0 : index
    %18 = vector.load %arg4[%c0_16, %c3_17, %c0_18, %c0_19] : memref<1x4x2x128xf32, #tpu.memory_space<vmem>>, vector<1x1x2x128xf32>
    %19 = vector.shape_cast %18 : vector<1x1x2x128xf32> to vector<2x128xf32>
    %20 = vector.broadcast %17 : f32 to vector<2x128xf32>
    %21 = arith.mulf %20, %19 : vector<2x128xf32>
    %22 = arith.addf %16, %21 : vector<2x128xf32>
    %c0_20 = arith.constant 0 : index
    %23 = memref.load %arg3[%c0_20] : memref<3xf32, #tpu.memory_space<smem>>
    %24 = vector.broadcast %23 : f32 to vector<2x128xf32>
    %25 = arith.addf %22, %24 : vector<2x128xf32>
    %c0_21 = arith.constant 0 : index
    %c0_22 = arith.constant 0 : index
    %c0_23 = arith.constant 0 : index
    %c0_24 = arith.constant 0 : index
    %26 = vector.load %arg5[%c0_21, %c0_22, %c0_23, %c0_24] : memref<1x3x2x128xf32, #tpu.memory_space<vmem>>, vector<1x1x2x128xf32>
    %27 = vector.shape_cast %26 : vector<1x1x2x128xf32> to vector<2x128xf32>
    %28 = vector.shape_cast %25 : vector<2x128xf32> to vector<1x1x2x128xf32>
    tpu.vector_store %arg5[%c0_21, %c0_22, %c0_23, %c0_24], %28 {strides = array<i32>} : memref<1x3x2x128xf32, #tpu.memory_space<vmem>>, vector<1x1x2x128xf32>,
    %c1_25 = arith.constant 1 : index
    %c0_26 = arith.constant 0 : index
    %29 = memref.load %arg2[%c1_25, %c0_26] : memref<3x4xf32, #tpu.memory_space<smem>>
    %c0_27 = arith.constant 0 : index
    %c0_28 = arith.constant 0 : index
    %c0_29 = arith.constant 0 : index
    %c0_30 = arith.constant 0 : index
    %30 = vector.load %arg4[%c0_27, %c0_28, %c0_29, %c0_30] : memref<1x4x2x128xf32, #tpu.memory_space<vmem>>, vector<1x1x2x128xf32>
    %31 = vector.shape_cast %30 : vector<1x1x2x128xf32> to vector<2x128xf32>
    %32 = vector.broadcast %29 : f32 to vector<2x128xf32>
    %33 = arith.mulf %32, %31 : vector<2x128xf32>
    %c1_31 = arith.constant 1 : index
    %c1_32 = arith.constant 1 : index
    %34 = memref.load %arg2[%c1_31, %c1_32] : memref<3x4xf32, #tpu.memory_space<smem>>
    %c0_33 = arith.constant 0 : index
    %c1_34 = arith.constant 1 : index
    %c0_35 = arith.constant 0 : index
    %c0_36 = arith.constant 0 : index
    %35 = vector.load %arg4[%c0_33, %c1_34, %c0_35, %c0_36] : memref<1x4x2x128xf32, #tpu.memory_space<vmem>>, vector<1x1x2x128xf32>
    %36 = vector.shape_cast %35 : vector<1x1x2x128xf32> to vector<2x128xf32>
    %37 = vector.broadcast %34 : f32 to vector<2x128xf32>
    %38 = arith.mulf %37, %36 : vector<2x128xf32>
    %39 = arith.addf %33, %38 : vector<2x128xf32>
    %c1_37 = arith.constant 1 : index
    %c2_38 = arith.constant 2 : index
    %40 = memref.load %arg2[%c1_37, %c2_38] : memref<3x4xf32, #tpu.memory_space<smem>>
    %c0_39 = arith.constant 0 : index
    %c2_40 = arith.constant 2 : index
    %c0_41 = arith.constant 0 : index
    %c0_42 = arith.constant 0 : index
    %41 = vector.load %arg4[%c0_39, %c2_40, %c0_41, %c0_42] : memref<1x4x2x128xf32, #tpu.memory_space<vmem>>, vector<1x1x2x128xf32>
    %42 = vector.shape_cast %41 : vector<1x1x2x128xf32> to vector<2x128xf32>
    %43 = vector.broadcast %40 : f32 to vector<2x128xf32>
    %44 = arith.mulf %43, %42 : vector<2x128xf32>
    %45 = arith.addf %39, %44 : vector<2x128xf32>
    %c1_43 = arith.constant 1 : index
    %c3_44 = arith.constant 3 : index
    %46 = memref.load %arg2[%c1_43, %c3_44] : memref<3x4xf32, #tpu.memory_space<smem>>
    %c0_45 = arith.constant 0 : index
    %c3_46 = arith.constant 3 : index
    %c0_47 = arith.constant 0 : index
    %c0_48 = arith.constant 0 : index
    %47 = vector.load %arg4[%c0_45, %c3_46, %c0_47, %c0_48] : memref<1x4x2x128xf32, #tpu.memory_space<vmem>>, vector<1x1x2x128xf32>
    %48 = vector.shape_cast %47 : vector<1x1x2x128xf32> to vector<2x128xf32>
    %49 = vector.broadcast %46 : f32 to vector<2x128xf32>
    %50 = arith.mulf %49, %48 : vector<2x128xf32>
    %51 = arith.addf %45, %50 : vector<2x128xf32>
    %c1_49 = arith.constant 1 : index
    %52 = memref.load %arg3[%c1_49] : memref<3xf32, #tpu.memory_space<smem>>
    %53 = vector.broadcast %52 : f32 to vector<2x128xf32>
    %54 = arith.addf %51, %53 : vector<2x128xf32>
    %c0_50 = arith.constant 0 : index
    %c1_51 = arith.constant 1 : index
    %c0_52 = arith.constant 0 : index
    %c0_53 = arith.constant 0 : index
    %55 = vector.load %arg5[%c0_50, %c1_51, %c0_52, %c0_53] : memref<1x3x2x128xf32, #tpu.memory_space<vmem>>, vector<1x1x2x128xf32>
    %56 = vector.shape_cast %55 : vector<1x1x2x128xf32> to vector<2x128xf32>
    %57 = vector.shape_cast %54 : vector<2x128xf32> to vector<1x1x2x128xf32>
    tpu.vector_store %arg5[%c0_50, %c1_51, %c0_52, %c0_53], %57 {strides = array<i32>} : memref<1x3x2x128xf32, #tpu.memory_space<vmem>>, vector<1x1x2x128xf32>,
    %c2_54 = arith.constant 2 : index
    %c0_55 = arith.constant 0 : index
    %58 = memref.load %arg2[%c2_54, %c0_55] : memref<3x4xf32, #tpu.memory_space<smem>>
    %c0_56 = arith.constant 0 : index
    %c0_57 = arith.constant 0 : index
    %c0_58 = arith.constant 0 : index
    %c0_59 = arith.constant 0 : index
    %59 = vector.load %arg4[%c0_56, %c0_57, %c0_58, %c0_59] : memref<1x4x2x128xf32, #tpu.memory_space<vmem>>, vector<1x1x2x128xf32>
    %60 = vector.shape_cast %59 : vector<1x1x2x128xf32> to vector<2x128xf32>
    %61 = vector.broadcast %58 : f32 to vector<2x128xf32>
    %62 = arith.mulf %61, %60 : vector<2x128xf32>
    %c2_60 = arith.constant 2 : index
    %c1_61 = arith.constant 1 : index
    %63 = memref.load %arg2[%c2_60, %c1_61] : memref<3x4xf32, #tpu.memory_space<smem>>
    %c0_62 = arith.constant 0 : index
    %c1_63 = arith.constant 1 : index
    %c0_64 = arith.constant 0 : index
    %c0_65 = arith.constant 0 : index
    %64 = vector.load %arg4[%c0_62, %c1_63, %c0_64, %c0_65] : memref<1x4x2x128xf32, #tpu.memory_space<vmem>>, vector<1x1x2x128xf32>
    %65 = vector.shape_cast %64 : vector<1x1x2x128xf32> to vector<2x128xf32>
    %66 = vector.broadcast %63 : f32 to vector<2x128xf32>
    %67 = arith.mulf %66, %65 : vector<2x128xf32>
    %68 = arith.addf %62, %67 : vector<2x128xf32>
    %c2_66 = arith.constant 2 : index
    %c2_67 = arith.constant 2 : index
    %69 = memref.load %arg2[%c2_66, %c2_67] : memref<3x4xf32, #tpu.memory_space<smem>>
    %c0_68 = arith.constant 0 : index
    %c2_69 = arith.constant 2 : index
    %c0_70 = arith.constant 0 : index
    %c0_71 = arith.constant 0 : index
    %70 = vector.load %arg4[%c0_68, %c2_69, %c0_70, %c0_71] : memref<1x4x2x128xf32, #tpu.memory_space<vmem>>, vector<1x1x2x128xf32>
    %71 = vector.shape_cast %70 : vector<1x1x2x128xf32> to vector<2x128xf32>
    %72 = vector.broadcast %69 : f32 to vector<2x128xf32>
    %73 = arith.mulf %72, %71 : vector<2x128xf32>
    %74 = arith.addf %68, %73 : vector<2x128xf32>
    %c2_72 = arith.constant 2 : index
    %c3_73 = arith.constant 3 : index
    %75 = memref.load %arg2[%c2_72, %c3_73] : memref<3x4xf32, #tpu.memory_space<smem>>
    %c0_74 = arith.constant 0 : index
    %c3_75 = arith.constant 3 : index
    %c0_76 = arith.constant 0 : index
    %c0_77 = arith.constant 0 : index
    %76 = vector.load %arg4[%c0_74, %c3_75, %c0_76, %c0_77] : memref<1x4x2x128xf32, #tpu.memory_space<vmem>>, vector<1x1x2x128xf32>
    %77 = vector.shape_cast %76 : vector<1x1x2x128xf32> to vector<2x128xf32>
    %78 = vector.broadcast %75 : f32 to vector<2x128xf32>
    %79 = arith.mulf %78, %77 : vector<2x128xf32>
    %80 = arith.addf %74, %79 : vector<2x128xf32>
    %c2_78 = arith.constant 2 : index
    %81 = memref.load %arg3[%c2_78] : memref<3xf32, #tpu.memory_space<smem>>
    %82 = vector.broadcast %81 : f32 to vector<2x128xf32>
    %83 = arith.addf %80, %82 : vector<2x128xf32>
    %c0_79 = arith.constant 0 : index
    %c2_80 = arith.constant 2 : index
    %c0_81 = arith.constant 0 : index
    %c0_82 = arith.constant 0 : index
    %84 = vector.load %arg5[%c0_79, %c2_80, %c0_81, %c0_82] : memref<1x3x2x128xf32, #tpu.memory_space<vmem>>, vector<1x1x2x128xf32>
    %85 = vector.shape_cast %84 : vector<1x1x2x128xf32> to vector<2x128xf32>
    %86 = vector.shape_cast %83 : vector<2x128xf32> to vector<1x1x2x128xf32>
    tpu.vector_store %arg5[%c0_79, %c2_80, %c0_81, %c0_82], %86 {strides = array<i32>} : memref<1x3x2x128xf32, #tpu.memory_space<vmem>>, vector<1x1x2x128xf32>,
    return
  }
  func.func @transform_0(%arg0: i32, %arg1: i32) -> (i32, i32) {
    %c0_i32 = arith.constant 0 : i32
    %c0_i32_0 = arith.constant 0 : i32
    %c0_i32_1 = arith.constant 0 : i32
    return %c0_i32, %c0_i32_0 : i32, i32
  }
  func.func @transform_1(%arg0: i32, %arg1: i32) -> i32 {
    %c0_i32 = arith.constant 0 : i32
    %c0_i32_0 = arith.constant 0 : i32
    return %c0_i32 : i32
  }
  func.func @transform_2(%arg0: i32, %arg1: i32) -> (i32, i32, i32, i32) {
    %c0_i32 = arith.constant 0 : i32
    %c0_i32_0 = arith.constant 0 : i32
    %c0_i32_1 = arith.constant 0 : i32
    return %arg0, %c0_i32, %arg1, %c0_i32_0 : i32, i32, i32, i32
  }
  func.func @transform_3(%arg0: i32, %arg1: i32) -> (i32, i32, i32, i32) {
    %c0_i32 = arith.constant 0 : i32
    %c0_i32_0 = arith.constant 0 : i32
    %c0_i32_1 = arith.constant 0 : i32
    return %arg0, %c0_i32, %arg1, %c0_i32_0 : i32, i32, i32, i32
  }
}

</mosaic_0001>

<bundles_post_ra>
// kernel: tpu_custom_call.1
= control target key start
LH: loop header
LB: loop body
LE: loop exit
PB: predicated region body
PF: predicated region fallthrough
CT: control target
= control target key end

     0   :  { %8 = vsyncpa [#allocation5], 0  ;;  %s1006_s0 = inlined_call_operand.hbm [shape: f32[3,4], index: 0, kind: input, shape index: {}]   ;;  %s1007_s1 = inlined_call_operand.vmem [shape: f32[3], index: 1, kind: input, shape index: {}]   ;;  %s1008_s2 = inlined_call_operand.hbm [shape: f32[2,4,2,128], index: 2, kind: input, shape index: {}]   ;;  %s1009_s3 = inlined_call_operand.hbm [shape: f32[2,3,2,128], index: 3, kind: output, shape index: {}]  }
   0x1   :  { %9 = vsyncpa [#allocation6], 0 }
   0x2   :  { %10 = vsyncpa [#allocation3], 0 }
   0x3   :  { %12 = vsyncpa [#allocation3 + $0x1], 0 }
   0x4   :  { %13 = vsyncpa [#allocation4], 0 }
   0x5   :  { %15 = vsyncpa [#allocation4 + $0x1], 0  ;;  %s737_s12 = smov 0   ;;  %s739_s13 = smov 0  }
   0x6   :  { %s741_s14 = smov 0   ;;  %s743_s15 = smov 0  }
   0x7   :  { %s745_s16 = smov 0   ;;  %s747_s17 = smov 0  }
   0x8 LB: > { %s429_s18 = sadd.s32 4294967295, %s707_s17   ;;  %s430_s19 = sadd.s32 4294967294, %s707_s17   ;;  %s707_s17 = sphi %s747_s17, %s21_s17   ;;  %s703_s16 = sphi %s745_s16, %s1030_s16   ;;  %s699_s15 = sphi %s743_s15, %s1029_s15   ;;  %s695_s14 = sphi %s741_s14, %s1028_s14   ;;  %s691_s13 = sphi %s739_s13, %s1027_s13   ;;  %s687_s12 = sphi %s737_s12, %s1026_s12  }
   0x9   : > { %s84_s20 = sadd.s32 1, %s695_s14  ;;  %p91_p0 = scmp.ne.s32.totalorder %s695_s14, %s691_s13 }
   0xa   : > { %p92_p1 = scmp.eq.s32.totalorder %s707_s17, 0  ;;  %p97_p2 = scmp.ne.s32.totalorder %s691_s13, %s687_s12 }
   0xb   : > { %p775_p3 = scmp.eq.s32.totalorder %s429_s18, 0  ;;  %p123_p4 = scmp.eq.s32.totalorder %s429_s18, 1 }
   0xc   : > { %p93_p5 = por %p92_p1, %p91_p0  ;;  %p129_p6 = scmp.eq.s32.totalorder %s430_s19, 1 }
   0xd   : > { %s1014_s21 = scalar_select %p775_p3, 1, 0 }
   0xe   : > { %p781_p7 = por %p775_p3, %p97_p2  ;;  %p785_p8 = por %p123_p4, %p91_p0 }
   0xf   : > { %p789_p9 = por %p129_p6, %p97_p2  ;;  %p431_p10 = scmp.ge.s32.totalorder %s707_s17, 1 }
  0x10   : > { %s1015_s22 = scalar_select %p781_p7, 1, 0 }
  0x11   : > { %s1016_s23 = scalar_select %p785_p8, 1, 0 }
  0x12   : > { %s1017_s24 = scalar_select %p789_p9, 1, 0 }
  0x13   : > { %p136_p11 = scmp.lt.s32.totalorder %s707_s17, 3  ;;  %p501_p1 = scmp.lt.s32.totalorder %s707_s17, 2 }
  0x14   : > { %s158_s28 = sshll.u32 %s1007_s1, 4  ;;  %s169_s4 = sand.u32 1, %s695_s14   ;;  %s159_s28 = int_to_ptr.vmem [resolvable:$true] %s158_s28 }
  0x15   : > { %p796_p13 = pnand %p431_p10, %p136_p11  ;;  %p806_p4 = pnand %p501_p1, %p93_p5 }
  0x16   : > { %s33_s5 = sadd.s32 1, %s703_s16  ;;  %s559_s8 = scalar_lea.hbm %s1006_s0, 64 }
  0x17   : > { %p484_p0 = pneg %p796_p13  ;;  %p560_p5 = scmp.ne.s32.totalorder %s1006_s0, %s559_s8 }
  0x18   : > { %p566_p1 = scmp.lt.u32.totalorder %s559_s8, %s1006_s0 }
  0x19   : > { %p812_p2 = pnand %p484_p0, %p775_p3 }
  0x1b   : > { %p561_p6 = pneg %p812_p2 }
  0x1d   : > { %p562_p10 = pnand %p561_p6, %p560_p5 }
  0x1f   : > { %p563_p11 = pneg %p562_p10 }
  0x21   : > { %p568_p0 = pnand %p566_p1, %p563_p11 }
  0x23   : > { %571 = shalt.err (!%p568_p0)
}
  0x24   : > { %s709_s19 = smov [#allocation2]   ;;  %s572_s6 = scalar_lea.vmem %s159_s28, 16 }
  0x25   : > { %487 = dma.hbm_to_smem (!%p812_p2), %s1006_s0, 64, %s709_s19, [#allocation5]  }
  0x26   : > { %p573_p12 = scmp.ne.s32.totalorder %s159_s28, %s572_s6  ;;  %p580_p7 = scmp.lt.s32.totalorder %s159_s28, %s159_s28 }
  0x27   : > { %p581_p5 = scmp.lt.s32.totalorder %s572_s6, %s572_s6 }
  0x28   : > { %p575_p9 = pnand %p573_p12, %p561_p6 }
  0x29   : > { %p582_p10 = por %p581_p5, %p580_p7 }
  0x2a   : > { %p576_p8 = pneg %p575_p9 }
  0x2c   : > { %p583_p3 = pnand %p582_p10, %p576_p8 }
  0x2e   : > { %586 = shalt.err (!%p583_p3)
}
  0x2f   : > { %s710_s7 = smov [#allocation7]   ;;  %p35_p11 = scmp.ge.s32.totalorder %s33_s5, 2 }
  0x30   : > { %490 = dma.vmem_to_smem (!%p812_p2), %s159_s28, 16, %s710_s7, [#allocation6]  }
  0x31   : > { %s435_s8 = sshll.u32 %s169_s4, 3  ;;  %s469_s9 = sshll.u32 %s703_s16, 7 }
  0x32   : > { %s1032_s5 = smov (%p35_p11, %s33_s5), 0  ;;  %s844_s30 = scalar_lea.hbm %s1008_s2, %s469_s9 }
  0x33   : > { %s79_s18 = ssub.s32 %s703_s16, %s1032_s5  ;;  %s173_s19 = scalar_lea.vmem [#allocation8], %s435_s8 }
  0x34   : > { %s181_s28 = sshll.u32 %s173_s19, 4  ;;  %p82_p3 = scmp.eq.s32.totalorder %s79_s18, 0  ;;  %s848_s28 = int_to_ptr.vmem [resolvable:$true] %s181_s28 }
  0x35   : > { %s857_s27 = scalar_lea.sflag [#allocation3], %s169_s4  ;;  %s587_s6 = scalar_lea.hbm %s844_s30, 128 }
  0x36   : > { %s853_s26 = scalar_select %p82_p3, %s695_s14, %s84_s20  }
  0x37   : > { %p588_p7 = scmp.ne.s32.totalorder %s844_s30, %s587_s6  ;;  %p589_p8 = pneg %p806_p4 }
  0x38   : > { %s592_s9 = scalar_lea.hbm %s1008_s2, 256  ;;  %p593_p2 = scmp.lt.u32.totalorder %s844_s30, %s1008_s2 }
  0x39   : > { %p590_p9 = pnand %p589_p8, %p588_p7  ;;  %p594_p6 = scmp.lt.u32.totalorder %s592_s9, %s587_s6 }
  0x3a   : > { %p596_p0 = scmp.lt.u32.totalorder %s587_s6, %s844_s30 }
  0x3b   : > { %p591_p12 = pneg %p590_p9  ;;  %p595_p1 = por %p594_p6, %p593_p2 }
  0x3d   : > { %p597_p5 = por %p596_p0, %p595_p1 }
  0x3f   : > { %p598_p10 = pnand %p597_p5, %p591_p12 }
  0x41   : > { %601 = shalt.err (!%p598_p10)
}
  0x42   : > { %s602_s20 = scalar_lea.vmem %s848_s28, 128  ;;  %s711_s4 = smov [#allocation8]  }
  0x43   : > { %p603_p11 = scmp.ne.s32.totalorder %s848_s28, %s602_s20  ;;  %s607_s18 = sshll.u32 %s711_s4, 4  ;;  %s608_s18 = int_to_ptr.vmem [resolvable:$false] %s607_s18 }
  0x44   : > { %s609_s19 = scalar_lea.vmem %s608_s18, 256  ;;  %p610_p9 = scmp.lt.s32.totalorder %s848_s28, %s608_s18 }
  0x45   : > { %p605_p3 = pnand %p603_p11, %p589_p8  ;;  %p611_p2 = scmp.lt.s32.totalorder %s609_s19, %s602_s20 }
  0x47   : > { %p606_p7 = pneg %p605_p3  ;;  %p612_p6 = por %p611_p2, %p610_p9 }
  0x49   : > { %p613_p1 = pnand %p612_p6, %p606_p7 }
  0x4b   : > { %616 = shalt.err (!%p613_p1)
}
  0x4c   : > { %s712_s6 = smov 32   ;;  %s713_s7 = smov 2  }
  0x4d   : > { %494 = dma.hbm_to_vmem [thread:$0]  (!%p806_p4), %s844_s30, 128, %s848_s28, %s857_s27, %s712_s6, %s712_s6, %s713_s7  }
  0x4e   : > { %193 = sbr.rel (%p796_p13) target bundleno = 131 (0x83), region = 32  ;;  %p1021_p8 = scmp.ne.s32.totalorder (!%p796_p13), %s1014_s21, 0 }
  0x55   : > { %670 = dma.done.wait (%p1021_p8), [#allocation5], 64  }
  0x56   : > { %672 = vsyncadd (%p1021_p8), [#allocation5], 4294967232 }
  0x57   : > { %674 = dma.done.wait (%p1021_p8), [#allocation6], 16  }
  0x58   : > { %676 = vsyncadd (%p1021_p8), [#allocation6], 4294967280  ;;  %s896_s8 = sand.u32 1, %s691_s13   ;;  %p1022_p13 = scmp.ne.s32.totalorder %s1015_s22, 0 }
  0x59   : > { %s441_s25 = sshll.u32 %s896_s8, 3  ;;  %s204_s29 = scalar_lea.sflag [#allocation3], %s896_s8 }
  0x5a   : > { %s900_s30 = scalar_lea.vmem [#allocation8], %s441_s25 }
  0x5b   : > { %678 = dma.done.wait (%p1022_p13), %s204_s29, 128  }
  0x5c   : > { %680 = vsyncadd (%p1022_p13), %s204_s29, 4294967168 }
  0x5d   : > { %212 = sfence }
  0x5e   : > { %s231_s28 = sld [smem:[#allocation2]]  ;;  %s442_s21 = sld [smem:[#allocation2 + $0x1]]  ;;  %v232_v0 = vld [vmem:[%s900_s30] sm:$0x3]  ;;  %v443_v1 = vld [vmem:[%s900_s30 + $0x2] sm:$0x3] }
  0x5f   : > { %s444_s27 = sld [smem:[#allocation2 + $0x2]]  ;;  %s446_s9 = sld [smem:[#allocation2 + $0x3]]  ;;  %v445_v2 = vld [vmem:[%s900_s30 + $0x4] sm:$0x3]  ;;  %v447_v7 = vld [vmem:[%s900_s30 + $0x6] sm:$0x3] }
  0x60   : > { %s908_s10 = sld [smem:[#allocation7]]  ;;  %s911_s20 = sld [smem:[#allocation2 + $0x81]]  ;;  %v258_v11 = vld [vmem:[%s900_s30] sm:$0x3]  ;;  %v450_v12 = vld [vmem:[%s900_s30 + $0x2] sm:$0x3] }
  0x61   : > { %s448_s11 = sld [smem:[#allocation2 + $0x80]]  ;;  %s913_s22 = sld [smem:[#allocation2 + $0x82]]  ;;  %v452_v13 = vld [vmem:[%s900_s30 + $0x4] sm:$0x3]  ;;  %v454_v17 = vld [vmem:[%s900_s30 + $0x6] sm:$0x3] }
  0x62   : > { %s915_s4 = sld [smem:[#allocation2 + $0x83]]  ;;  %s918_s18 = sld [smem:[#allocation2 + $0x100]]  ;;  %v282_v21 = vld [vmem:[%s900_s30] sm:$0x3]  ;;  %v459_v22 = vld [vmem:[%s900_s30 + $0x2] sm:$0x3] }
  0x63   : > { %s920_s19 = sld [smem:[#allocation2 + $0x101]]  ;;  %s924_s6 = sld [smem:[#allocation2 + $0x102]]  ;;  %v461_v31 = vld [vmem:[%s900_s30 + $0x4] sm:$0x3]  ;;  %v463_v36 = vld [vmem:[%s900_s30 + $0x6] sm:$0x3] }
  0x64   : > { %v233_v3 = vstv %s231_s28  ;;  %v238_v5 = vstv %s442_s21  ;;  %s927_s7 = sld [smem:[#allocation7 + $0x1]]  ;;  %s929_s25 = sld [smem:[#allocation2 + $0x103]] }
  0x65   : > { %v234_v4 = vmul.f32 %v233_v3, %v232_v0  ;;  %v244_v6 = vstv %s444_s27  ;;  %v239_v8 = vmul.f32 %v443_v1, %v238_v5  ;;  %v250_v10 = vstv %s446_s9  ;;  %s470_s29 = smul.u32 6, %s896_s8  ;;  %s937_s28 = sld [smem:[#allocation7 + $0x2]] }
  0x66   : > { %v245_v9 = vmul.f32 %v445_v2, %v244_v6  ;;  %v251_v15 = vmul.f32 %v447_v7, %v250_v10  ;;  %v263_v19 = vstv %s911_s20  ;;  %v254_v27 = vstv %s908_s10  ;;  %s471_s9 = smul.u32 96, %s699_s15  ;;  %s306_s20 = scalar_lea.sflag [#allocation4], %s896_s8 }
  0x67   : > { %v240_v14 = vadd.f32 %v239_v8, %v234_v4  ;;  %v259_v16 = vstv %s448_s11  ;;  %v268_v20 = vstv %s913_s22  ;;  %v264_v24 = vmul.f32 %v450_v12, %v263_v19  ;;  %s230_s21 = scalar_lea.vmem [#allocation9], %s470_s29  ;;  %p1023_p12 = scmp.ne.s32.totalorder %s1016_s23, 0 }
  0x68   : > { %v260_v18 = vmul.f32 %v259_v16, %v258_v11  ;;  %v269_v25 = vmul.f32 %v452_v13, %v268_v20  ;;  %v273_v26 = vstv %s915_s4  ;;  %v283_v29 = vstv %s918_s18  ;;  %s320_s27 = sshll.u32 %s230_s21, 4  ;;  %s957_s11 = scalar_lea.hbm %s1009_s3, %s471_s9  ;;  %s952_s27 = int_to_ptr.vmem [resolvable:$true] %s320_s27 }
  0x69   : > { %v246_v23 = vadd.f32 %v245_v9, %v240_v14  ;;  %v274_v28 = vmul.f32 %v454_v17, %v273_v26  ;;  %v287_v30 = vstv %s920_s19  ;;  %v284_v34 = vmul.f32 %v283_v29, %v282_v21  ;;  %s617_s22 = scalar_lea.vmem %s952_s27, 96  ;;  %s714_s15 = smov [#allocation9]  }
  0x6a   : > { %v265_v33 = vadd.f32 %v264_v24, %v260_v18  ;;  %v288_v35 = vmul.f32 %v459_v22, %v287_v30  ;;  %v292_v37 = vstv %s924_s6  ;;  %v297_v38 = vstv %s929_s25  ;;  %p618_p4 = scmp.ne.s32.totalorder %s952_s27, %s617_s22  ;;  %s621_s4 = sshll.u32 %s714_s15, 4  ;;  %s622_s4 = int_to_ptr.vmem [resolvable:$false] %s621_s4 }
  0x6b   : > { %v252_v32 = vadd.f32 %v251_v15, %v246_v23  ;;  %v293_v42 = vmul.f32 %v461_v31, %v292_v37  ;;  %v277_v43 = vstv %s927_s7  ;;  %v298_v44 = vmul.f32 %v463_v36, %v297_v38  ;;  %s623_s18 = scalar_lea.vmem %s622_s4, 192  ;;  %p624_p10 = scmp.lt.s32.totalorder %s952_s27, %s622_s4 }
  0x6c   : > { %v270_v40 = vadd.f32 %v269_v25, %v265_v33  ;;  %v289_v41 = vadd.f32 %v288_v35, %v284_v34  ;;  %v301_v47 = vstv %s937_s28  ;;  %p619_p0 = pnand %p618_p4, %p1023_p12  ;;  %p625_p11 = scmp.lt.s32.totalorder %s623_s18, %s617_s22 }
  0x6d   : > { %v255_v39 = vadd.f32 %v254_v27, %v252_v32 }
  0x6e   : > { %v275_v45 = vadd.f32 %v274_v28, %v270_v40  ;;  %v294_v46 = vadd.f32 %v293_v42, %v289_v41  ;;  %p620_p5 = pneg %p619_p0  ;;  %p626_p3 = por %p625_p11, %p624_p10 }
  0x6f   : > { %256 = vst [vmem:[%s230_s21] sm:$0x3] %v255_v39 }
  0x70   : > { %v278_v48 = vadd.f32 %v277_v43, %v275_v45  ;;  %v299_v49 = vadd.f32 %v298_v44, %v294_v46  ;;  %p627_p7 = pnand %p626_p3, %p620_p5 }
  0x72   : > { %456 = vst [vmem:[%s230_s21 + $0x2] sm:$0x3] %v278_v48  ;;  %v302_v50 = vadd.f32 %v301_v47, %v299_v49 }
  0x74   : > { %465 = vst [vmem:[%s230_s21 + $0x4] sm:$0x3] %v302_v50 }
  0x75   : > { %630 = shalt.err (!%p627_p7)
}
  0x76   : > { %s631_s19 = scalar_lea.hbm %s957_s11, 96  ;;  %s635_s25 = scalar_lea.hbm %s1009_s3, 192 }
  0x77   : > { %p632_p9 = scmp.ne.s32.totalorder %s957_s11, %s631_s19  ;;  %p636_p1 = scmp.lt.u32.totalorder %s957_s11, %s1009_s3 }
  0x78   : > { %p637_p8 = scmp.lt.u32.totalorder %s635_s25, %s631_s19  ;;  %p639_p4 = scmp.lt.u32.totalorder %s631_s19, %s957_s11 }
  0x79   : > { %p633_p2 = pnand %p632_p9, %p1023_p12 }
  0x7a   : > { %p638_p13 = por %p637_p8, %p636_p1 }
  0x7b   : > { %p634_p6 = pneg %p633_p2 }
  0x7c   : > { %p640_p0 = por %p639_p4, %p638_p13 }
  0x7e   : > { %p641_p5 = pnand %p640_p0, %p634_p6 }
  0x80   : > { %644 = shalt.err (!%p641_p5)
}
  0x81   : > { %s715_s21 = smov 32   ;;  %s716_s9 = smov 2  }
  0x82   : > { %482 = dma.vmem_to_hbm [thread:$0]  (%p1023_p12), %s952_s27, 96, %s957_s11, %s306_s20, %s715_s21, %s715_s21, %s716_s9  }
  0x83 PF: > { %s335_s30 = sand.u32 1, %s687_s12   ;;  %p1024_p10 = scmp.ne.s32.totalorder %s1017_s24, 0 }
  0x84   : > { %p1025_p11 = scmp.ge.s32.totalorder %s707_s17, 2  ;;  %s336_s10 = scalar_lea.sflag [#allocation4], %s335_s30 }
  0x86   : > { %p496_p3 = pnand %p1025_p11, %p1024_p10 }
  0x88   : > { %682 = dma.done.wait (!%p496_p3), %s336_s10, 96  }
  0x89   : > { %684 = vsyncadd (!%p496_p3), %s336_s10, 4294967200  ;;  %s21_s17 = sadd.s32 1, %s707_s17   ;;  %s1026_s12 = smov %s691_s13 }
  0x8a   : > { %p18_p7 = scmp.ge.s32.totalorder %s21_s17, 4   ;;  %s1027_s13 = smov %s695_s14 }
  0x8b   : > { %s1028_s14 = smov %s853_s26  ;;  %s1029_s15 = smov %s703_s16 }
  0x8c   : > { %s1030_s16 = smov %s1032_s5  ;;  %20 = sbr.rel (!%p18_p7) target bundleno = 8 (0x8), region = 92 }
  0x93   :  { %341 = vsyncpa [#allocation3], 1 }
  0x94   :  { %343 = vsyncpa [#allocation3 + $0x1], 1 }
  0x95   :  { %344 = vsyncpa [#allocation4], 1 }
  0x96   :  { %346 = vsyncpa [#allocation4 + $0x1], 1 }
  0x97   :  { %347 = vsyncpa [#allocation5], 1 }
  0x98   :  { %349 = vsyncpa [#allocation5 + $0x1], 1 }
  0x99   :  { %350 = vsyncpa [#allocation6], 1 }
  0x9a   :  { %352 = vsyncpa [#allocation6 + $0x1], 1 }

</bundles_post_ra>
